<compile_context>
chip_gen: v7x
topology: tpu7x:2x2x1
jax: 0.10.0
libtpu: 0.0.40
codegen_flags: <defaults>
</compile_context>

<pallas_src>
import numpy as np
import jax
import jax.numpy as jnp
from jax.experimental import pallas as pl
from jax.experimental.pallas import tpu as pltpu


def _copy_kernel(x_ref, o_ref):
    # Identity copy of one lane/sublane-dense slab of the flattened tensor.
    o_ref[...] = x_ref[...]


_VMEM_LIMIT = 40 * 1024 * 1024  # safe on v5e/v6e (128 MiB) and v7x (64 MiB/TC)


def _identity_copy(slab, block_shape, grid, index_map):
    return pl.pallas_call(
        _copy_kernel,
        out_shape=jax.ShapeDtypeStruct(slab.shape, slab.dtype),
        grid=grid,
        in_specs=[pl.BlockSpec(block_shape, index_map)],
        out_specs=pl.BlockSpec(block_shape, index_map),
        compiler_params=pltpu.CompilerParams(
            dimension_semantics=("parallel",) * len(grid),
            vmem_limit_bytes=_VMEM_LIMIT,
        ),
    )(slab)


@jax.jit
def flatten_layer(x):
    """Pallas implementation of FlattenLayer.forward: (N, ...) -> (N, prod(...))."""
    n = x.shape[0]
    d = int(np.prod(x.shape[1:])) if x.ndim > 1 else 1
    total = n * d

    # Metadata-only row-major flatten (== torch x.view(N, -1)).
    x2 = x.reshape(n, d)
    if total == 0:
        return x2

    LANE = 128
    itemsize = jnp.dtype(x.dtype).itemsize
    SUB = max(8, 32 // itemsize)          # native sublane tile: 8 f32 / 16 bf16 / 32 i8
    TARGET_BLOCK_BYTES = 4 * 1024 * 1024  # ~4 MiB/block; in+out double-buffered ~= 16 MiB live
    MIN_STEPS = 8                         # keep >= 8 grid steps so both v7x TCs are fed

    if total % LANE == 0:
        # --- Lane/sublane-dense slab path ---------------------------------
        # Reshape the whole tensor to (rows, W) with W a large multiple of
        # 128: full vregs, unmasked stores, independent of the batch size.
        W = LANE
        while W * 2 <= 8192 and total % (W * 2) == 0 and total // (W * 2) >= SUB:
            W *= 2
        rows = total // W
        slab = x2.reshape(rows, W)

        block_rows = max(SUB, (TARGET_BLOCK_BYTES // (W * itemsize)) // SUB * SUB)
        if rows >= MIN_STEPS * SUB:
            # Grow blocks only as far as keeps >= MIN_STEPS parallel steps.
            block_rows = min(block_rows, max(SUB, (rows // MIN_STEPS) // SUB * SUB))
        block_rows = min(block_rows, rows)  # == rows (full dim) for tiny inputs

        grid = (pl.cdiv(rows, block_rows),)
        out = _identity_copy(slab, (block_rows, W), grid, lambda i: (i, 0))
        return out.reshape(n, d)

    # --- Fallback: total not a multiple of 128 -----------------------------
    # Tile BOTH axes so neither a large batch nor a large feature dim can
    # force a full-array VMEM block; ragged tails are masked via pl.cdiv.
    block_n = n if n <= 256 else 256       # full dim, or a multiple of 8
    block_d = d if d <= 2048 else 2048     # full dim, or a multiple of 128
    grid = (pl.cdiv(n, block_n), pl.cdiv(d, block_d))
    return _identity_copy(x2, (block_n, block_d), grid, lambda i, j: (i, j))


if __name__ == "__main__":
    key = jax.random.PRNGKey(0)
    # Small NCHW input consistent with a conv-net feature map: batch=2, C=4, H=W=16.
    x = jax.random.normal(key, (2, 4, 16, 16), dtype=jnp.float32)

    out = flatten_layer(x)
    out = jax.block_until_ready(out)

    # Reference: plain JAX flatten (== torch x.view(x.shape[0], -1)).
    ref = x.reshape(x.shape[0], -1)

    assert out.shape == (2, 4 * 16 * 16), out.shape
    assert out.dtype == x.dtype
    np.testing.assert_allclose(np.asarray(out), np.asarray(ref), rtol=0, atol=0)

    print("KERNEL_OK")
</pallas_src>

<mosaic_0001>
module attributes {stable_mosaic.version = 11 : i64} {
  func.func @_copy_kernel(%arg0: i32, %arg1: memref<8x256xf32, #tpu.memory_space<vmem>>, %arg2: memref<8x256xf32, #tpu.memory_space<vmem>>) attributes {dimension_semantics = [#tpu.dimension_semantics<parallel>], iteration_bounds = array<i64: 1>, scalar_prefetch = 0 : i64, scratch_operands = 0 : i64, tpu.core_type = #tpu.core_type<tc>, window_params = [{transform_indices = @transform_0, window_bounds = array<i64: 8, 256>}, {transform_indices = @transform_1, window_bounds = array<i64: 8, 256>}]} {
    %c0 = arith.constant 0 : index
    %c0_0 = arith.constant 0 : index
    %0 = vector.load %arg1[%c0, %c0_0] : memref<8x256xf32, #tpu.memory_space<vmem>>, vector<8x256xf32>
    %c0_1 = arith.constant 0 : index
    %c0_2 = arith.constant 0 : index
    %1 = vector.load %arg2[%c0_1, %c0_2] : memref<8x256xf32, #tpu.memory_space<vmem>>, vector<8x256xf32>
    tpu.vector_store %arg2[%c0_1, %c0_2], %0 {strides = array<i32>} : memref<8x256xf32, #tpu.memory_space<vmem>>, vector<8x256xf32>,
    return
  }
  func.func @transform_0(%arg0: i32) -> (i32, i32) {
    %c0_i32 = arith.constant 0 : i32
    %c0_i32_0 = arith.constant 0 : i32
    return %arg0, %c0_i32 : i32, i32
  }
  func.func @transform_1(%arg0: i32) -> (i32, i32) {
    %c0_i32 = arith.constant 0 : i32
    %c0_i32_0 = arith.constant 0 : i32
    return %arg0, %c0_i32 : i32, i32
  }
}

</mosaic_0001>

<bundles_post_ra>
// kernel: flatten_layer.1
= control target key start
LH: loop header
LB: loop body
LE: loop exit
PB: predicated region body
PF: predicated region fallthrough
CT: control target
= control target key end

     0   :  { %s38_s0 = inlined_call_operand.vmem [shape: f32[8,256], index: 0, kind: input, shape index: {}]   ;;  %s39_s1 = inlined_call_operand.vmem [shape: f32[8,256], index: 1, kind: output, shape index: {}]  }
   0x1   :  { %v8_v0 = vld [vmem:[%s38_s0] sm:$0xff]  ;;  %v9_v1 = vld [vmem:[%s38_s0 + $0x8] sm:$0xff] }
   0x2   :  { %10 = vst [vmem:[%s39_s1] sm:$0xff] %v8_v0  ;;  %11 = vst [vmem:[%s39_s1 + $0x8] sm:$0xff] %v9_v1 }

</bundles_post_ra>
